<compile_context>
chip_gen: v6e
topology: v6e:2x2x1
jax: 0.10.0
libtpu: 0.0.40
codegen_flags: <defaults>
</compile_context>

<pallas_src>
import math

import jax
import jax.numpy as jnp
from jax.experimental import pallas as pl
from jax.experimental.pallas import tpu as pltpu

LANE = 128
SUBLANE = 8
HEAD_PAD = 128                      # lane-dense fused-head / output width
DEFAULT_TB = 2048                   # batch tile (amortizes ~0.35us per-step cost)
VMEM_TARGET_BYTES = 40 * (1 << 20)  # tile-shrink budget (fits v7x 64 MiB physical)


def _round_up(n, m):
    return ((n + m - 1) // m) * m


def _round_down(n, m):
    return (n // m) * m


def _pad_dim(d):
    # Tiny dims stay as-is (padding 16->128 would just inflate DMA traffic);
    # large non-aligned dims (e.g. 200, 300) are rounded up so matmul vregs
    # stay lane-dense and MXU tiles stay full.
    return d if d <= LANE else _round_up(d, LANE)


# ----------------------------- kernel ---------------------------------------

def qnet_dueling_kernel(x_ref, w1_ref, b1_ref, w2_ref, b2_ref, wq_ref, bq_ref,
                        q_ref):
    x = x_ref[...]
    # feature layer: Linear -> ReLU -> Linear -> ReLU (bf16 MXU, f32 accumulate)
    h1 = jnp.dot(x, w1_ref[...], preferred_element_type=jnp.float32) + b1_ref[...]
    h1 = jnp.maximum(h1, 0.0).astype(w2_ref.dtype)
    h2 = jnp.dot(h1, w2_ref[...], preferred_element_type=jnp.float32) + b2_ref[...]
    h2 = jnp.maximum(h2, 0.0).astype(wq_ref.dtype)
    # dueling head with the (v + adv - mean(adv)) combine pre-folded into W_q
    q = jnp.dot(h2, wq_ref[...], preferred_element_type=jnp.float32) + bq_ref[...]
    q_ref[...] = q.astype(q_ref.dtype)


# ----------------------------- wrapper ---------------------------------------

def _vmem_estimate_bytes(tb, sdp, hdp, head_n, in_bytes, out_bytes):
    resident = (sdp * hdp + hdp * hdp + hdp * head_n) * in_bytes \
        + (2 * hdp + head_n) * 4
    streamed = 2 * tb * sdp * in_bytes + 2 * tb * head_n * out_bytes  # dbl-buffered
    temps = 2 * tb * hdp * (4 + in_bytes) + tb * head_n * 4           # h1/h2/q temps
    return resident + streamed + temps


def qnet_dueling_forward(x, kp, action_dim, *, tb=DEFAULT_TB,
                         out_dtype=jnp.bfloat16):
    B, state_dim = x.shape
    sdp, hdp = kp["w1"].shape
    head_n = kp["wq"].shape[1]
    cdtype = kp["w1"].dtype
    in_bytes = jnp.dtype(cdtype).itemsize
    out_bytes = jnp.dtype(out_dtype).itemsize

    x = x.astype(cdtype)

    # --- batch tile selection ---
    b_ceil = _round_up(max(B, 1), SUBLANE)
    tb = max(SUBLANE, min(_round_up(tb, SUBLANE), b_ceil))
    # v7x megacore: guarantee >= 2 grid steps so both TensorCores get work
    if b_ceil // tb < 2 and b_ceil >= 2 * SUBLANE:
        tb = max(SUBLANE, _round_down(b_ceil // 2, SUBLANE))
    # shrink the tile until the double-buffered VMEM footprint fits the budget
    while tb > SUBLANE and _vmem_estimate_bytes(
            tb, sdp, hdp, head_n, in_bytes, out_bytes) > VMEM_TARGET_BYTES:
        tb = max(SUBLANE, _round_down(tb // 2, SUBLANE))

    b_pad = _round_up(b_ceil, tb)
    pad_rows = b_pad - B
    pad_cols = sdp - state_dim
    if pad_rows or pad_cols:
        # TODO(synk): for very large B a ragged last tile (pl.when + masked
        # store) would avoid materializing this padded copy of x in HBM.
        x = jnp.pad(x, ((0, pad_rows), (0, pad_cols)))

    est = _vmem_estimate_bytes(tb, sdp, hdp, head_n, in_bytes, out_bytes)
    vmem_limit = int(min(56 << 20, max(16 << 20, 1.5 * est) + (2 << 20)))

    flops = 2 * b_pad * (sdp * hdp + hdp * hdp + hdp * head_n)
    bytes_accessed = (b_pad * sdp * in_bytes + b_pad * head_n * out_bytes
                      + (sdp * hdp + hdp * hdp + hdp * head_n) * in_bytes
                      + (2 * hdp + head_n) * 4)

    const2 = lambda i: (0, 0)  # resident (load-once) operands
    q_full = pl.pallas_call(
        qnet_dueling_kernel,
        out_shape=jax.ShapeDtypeStruct((b_pad, head_n), out_dtype),
        grid=(b_pad // tb,),
        in_specs=[
            pl.BlockSpec((tb, sdp), lambda i: (i, 0)),   # x: streamed per tile
            pl.BlockSpec((sdp, hdp), const2),            # W1 (resident, bf16)
            pl.BlockSpec((1, hdp), const2),              # b1 (f32)
            pl.BlockSpec((hdp, hdp), const2),            # W2
            pl.BlockSpec((1, hdp), const2),              # b2
            pl.BlockSpec((hdp, head_n), const2),         # folded head weights
            pl.BlockSpec((1, head_n), const2),           # folded head bias
        ],
        out_specs=pl.BlockSpec((tb, head_n), lambda i: (i, 0)),
        compiler_params=pltpu.CompilerParams(
            dimension_semantics=("parallel",),
            vmem_limit_bytes=vmem_limit),
        cost_estimate=pl.CostEstimate(flops=flops, transcendentals=0,
                                      bytes_accessed=bytes_accessed),
    )(x, kp["w1"], kp["b1"], kp["w2"], kp["b2"], kp["wq"], kp["bq"])

    return q_full[:B, :action_dim].astype(jnp.float32)


# ----------------------- param init / packing --------------------------------

def xavier_uniform(key, fan_in, fan_out):
    # matches torch.nn.init.xavier_uniform_ (gain=1.0); stored as (in, out)
    limit = math.sqrt(6.0 / (fan_in + fan_out))
    return jax.random.uniform(key, (fan_in, fan_out), jnp.float32, -limit, limit)


def init_params(key, state_dim, action_dim, hidden_dim):
    """Raw f32 params matching the PyTorch module (weights as (in, out))."""
    k1, k2, k3, k4 = jax.random.split(key, 4)
    return {
        "w1": xavier_uniform(k1, state_dim, hidden_dim),
        "b1": jnp.zeros((1, hidden_dim), jnp.float32),
        "w2": xavier_uniform(k2, hidden_dim, hidden_dim),
        "b2": jnp.zeros((1, hidden_dim), jnp.float32),
        "wv": xavier_uniform(k3, hidden_dim, 1),
        "bv": jnp.zeros((1, 1), jnp.float32),
        "wa": xavier_uniform(k4, hidden_dim, action_dim),
        "ba": jnp.zeros((1, action_dim), jnp.float32),
    }


def pack_params(p, action_dim, compute_dtype=jnp.bfloat16):
    """Fuse value/adv heads, fold the dueling combine into the weights,
    lane-pad large dims, and cast matmul operands to the compute dtype."""
    state_dim, hidden = p["w1"].shape
    a = int(action_dim)
    head_n = max(HEAD_PAD, _round_up(a + 1, LANE))

    # fused heads: columns [0, A) = advantage, column A = value, rest zero
    w_heads = jnp.zeros((hidden, head_n), jnp.float32)
    w_heads = w_heads.at[:, :a].set(p["wa"]).at[:, a:a + 1].set(p["wv"])
    b_heads = jnp.zeros((1, head_n), jnp.float32)
    b_heads = b_heads.at[:, :a].set(p["ba"]).at[:, a:a + 1].set(p["bv"])

    # dueling fold: q = heads @ M, with M zeroing the padding columns
    m = jnp.zeros((head_n, head_n), jnp.float32)
    m = m.at[:a, :a].set(jnp.eye(a, dtype=jnp.float32) - 1.0 / a)
    m = m.at[a, :a].set(1.0)
    w_q = w_heads @ m
    b_q = b_heads @ m

    # lane-pad large feature dims (zeros survive ReLU since biases pad to 0)
    sdp = _pad_dim(state_dim)
    hdp = _pad_dim(hidden)
    w1 = jnp.zeros((sdp, hdp), jnp.float32).at[:state_dim, :hidden].set(p["w1"])
    b1 = jnp.zeros((1, hdp), jnp.float32).at[:, :hidden].set(p["b1"])
    w2 = jnp.zeros((hdp, hdp), jnp.float32).at[:hidden, :hidden].set(p["w2"])
    b2 = jnp.zeros((1, hdp), jnp.float32).at[:, :hidden].set(p["b2"])
    wq = jnp.zeros((hdp, head_n), jnp.float32).at[:hidden, :].set(w_q)

    return {
        "w1": w1.astype(compute_dtype), "b1": b1,      # biases stay f32 (added
        "w2": w2.astype(compute_dtype), "b2": b2,      # to the f32 accumulator)
        "wq": wq.astype(compute_dtype), "bq": b_q,
    }


# ----------------------------- reference -------------------------------------

def reference_forward(x, p):
    h = jnp.maximum(x @ p["w1"] + p["b1"], 0.0)
    h = jnp.maximum(h @ p["w2"] + p["b2"], 0.0)
    v = h @ p["wv"] + p["bv"]
    adv = h @ p["wa"] + p["ba"]
    return v + adv - adv.mean(axis=-1, keepdims=True)


if __name__ == "__main__":
    batch, state_dim, action_dim, hidden_dim = 2, 16, 8, 32

    key = jax.random.PRNGKey(0)
    k_params, k_x = jax.random.split(key)
    raw = init_params(k_params, state_dim, action_dim, hidden_dim)
    kernel_params = pack_params(raw, action_dim)
    x = jax.random.normal(k_x, (batch, state_dim), jnp.float32)

    q = qnet_dueling_forward(x, kernel_params, action_dim)
    q = jax.block_until_ready(q)

    q_ref = reference_forward(x, raw)
    assert q.shape == (batch, action_dim)
    # bf16 matmul inputs + bf16 output store => loosened tolerance (per review)
    assert jnp.allclose(q, q_ref, atol=2e-2, rtol=2e-2), \
        float(jnp.max(jnp.abs(q - q_ref)))

    print("KERNEL_OK")
</pallas_src>

<mosaic_0001>
module attributes {stable_mosaic.version = 11 : i64} {
  func.func @qnet_dueling_kernel(%arg0: i32, %arg1: memref<8x16xbf16, #tpu.memory_space<vmem>>, %arg2: memref<16x32xbf16, #tpu.memory_space<vmem>>, %arg3: memref<1x32xf32, #tpu.memory_space<vmem>>, %arg4: memref<32x32xbf16, #tpu.memory_space<vmem>>, %arg5: memref<1x32xf32, #tpu.memory_space<vmem>>, %arg6: memref<32x128xbf16, #tpu.memory_space<vmem>>, %arg7: memref<1x128xf32, #tpu.memory_space<vmem>>, %arg8: memref<8x128xbf16, #tpu.memory_space<vmem>>) attributes {dimension_semantics = [#tpu.dimension_semantics<parallel>], iteration_bounds = array<i64: 1>, scalar_prefetch = 0 : i64, scratch_operands = 0 : i64, tpu.core_type = #tpu.core_type<tc>, window_params = [{transform_indices = @transform_0, window_bounds = array<i64: 8, 16>}, {pipeline_mode = #tpu.pipeline_mode<synchronous>, transform_indices = @transform_1, window_bounds = array<i64: 16, 32>}, {pipeline_mode = #tpu.pipeline_mode<synchronous>, transform_indices = @transform_2, window_bounds = array<i64: 1, 32>}, {pipeline_mode = #tpu.pipeline_mode<synchronous>, transform_indices = @transform_3, window_bounds = array<i64: 32, 32>}, {pipeline_mode = #tpu.pipeline_mode<synchronous>, transform_indices = @transform_4, window_bounds = array<i64: 1, 32>}, {pipeline_mode = #tpu.pipeline_mode<synchronous>, transform_indices = @transform_5, window_bounds = array<i64: 32, 128>}, {pipeline_mode = #tpu.pipeline_mode<synchronous>, transform_indices = @transform_6, window_bounds = array<i64: 1, 128>}, {transform_indices = @transform_7, window_bounds = array<i64: 8, 128>}]} {
    %c0 = arith.constant 0 : index
    %c0_0 = arith.constant 0 : index
    %0 = vector.load %arg1[%c0, %c0_0] : memref<8x16xbf16, #tpu.memory_space<vmem>>, vector<8x16xbf16>
    %c0_1 = arith.constant 0 : index
    %c0_2 = arith.constant 0 : index
    %1 = vector.load %arg2[%c0_1, %c0_2] : memref<16x32xbf16, #tpu.memory_space<vmem>>, vector<16x32xbf16>
    %cst = arith.constant dense<0.000000e+00> : vector<8x32xf32>
    %2 = tpu.matmul %0, %1, %cst {dimension_numbers = #tpu.dot_dimension_numbers<[1], [0], [0], [1], [0, 0, 1, 1], [], []>} : vector<8x16xbf16>, vector<16x32xbf16>, vector<8x32xf32> -> vector<8x32xf32>
    %c0_3 = arith.constant 0 : index
    %c0_4 = arith.constant 0 : index
    %3 = vector.load %arg3[%c0_3, %c0_4] : memref<1x32xf32, #tpu.memory_space<vmem>>, vector<1x32xf32>
    %4 = vector.broadcast %3 : vector<1x32xf32> to vector<8x32xf32>
    %5 = arith.addf %2, %4 : vector<8x32xf32>
    %cst_5 = arith.constant 0.000000e+00 : f32
    %6 = vector.broadcast %cst_5 : f32 to vector<8x32xf32>
    %7 = arith.maximumf %5, %6 : vector<8x32xf32>
    %8 = arith.truncf %7 : vector<8x32xf32> to vector<8x32xbf16>
    %c0_6 = arith.constant 0 : index
    %c0_7 = arith.constant 0 : index
    %9 = vector.load %arg4[%c0_6, %c0_7] : memref<32x32xbf16, #tpu.memory_space<vmem>>, vector<32x32xbf16>
    %cst_8 = arith.constant dense<0.000000e+00> : vector<8x32xf32>
    %10 = tpu.matmul %8, %9, %cst_8 {dimension_numbers = #tpu.dot_dimension_numbers<[1], [0], [0], [1], [0, 0, 1, 1], [], []>} : vector<8x32xbf16>, vector<32x32xbf16>, vector<8x32xf32> -> vector<8x32xf32>
    %c0_9 = arith.constant 0 : index
    %c0_10 = arith.constant 0 : index
    %11 = vector.load %arg5[%c0_9, %c0_10] : memref<1x32xf32, #tpu.memory_space<vmem>>, vector<1x32xf32>
    %12 = vector.broadcast %11 : vector<1x32xf32> to vector<8x32xf32>
    %13 = arith.addf %10, %12 : vector<8x32xf32>
    %cst_11 = arith.constant 0.000000e+00 : f32
    %14 = vector.broadcast %cst_11 : f32 to vector<8x32xf32>
    %15 = arith.maximumf %13, %14 : vector<8x32xf32>
    %16 = arith.truncf %15 : vector<8x32xf32> to vector<8x32xbf16>
    %c0_12 = arith.constant 0 : index
    %c0_13 = arith.constant 0 : index
    %17 = vector.load %arg6[%c0_12, %c0_13] : memref<32x128xbf16, #tpu.memory_space<vmem>>, vector<32x128xbf16>
    %cst_14 = arith.constant dense<0.000000e+00> : vector<8x128xf32>
    %18 = tpu.matmul %16, %17, %cst_14 {dimension_numbers = #tpu.dot_dimension_numbers<[1], [0], [0], [1], [0, 0, 1, 1], [], []>} : vector<8x32xbf16>, vector<32x128xbf16>, vector<8x128xf32> -> vector<8x128xf32>
    %c0_15 = arith.constant 0 : index
    %c0_16 = arith.constant 0 : index
    %19 = vector.load %arg7[%c0_15, %c0_16] : memref<1x128xf32, #tpu.memory_space<vmem>>, vector<1x128xf32>
    %20 = vector.broadcast %19 : vector<1x128xf32> to vector<8x128xf32>
    %21 = arith.addf %18, %20 : vector<8x128xf32>
    %22 = arith.truncf %21 : vector<8x128xf32> to vector<8x128xbf16>
    %c0_17 = arith.constant 0 : index
    %c0_18 = arith.constant 0 : index
    %23 = vector.load %arg8[%c0_17, %c0_18] : memref<8x128xbf16, #tpu.memory_space<vmem>>, vector<8x128xbf16>
    tpu.vector_store %arg8[%c0_17, %c0_18], %22 {strides = array<i32>} : memref<8x128xbf16, #tpu.memory_space<vmem>>, vector<8x128xbf16>,
    return
  }
  func.func @transform_0(%arg0: i32) -> (i32, i32) {
    %c0_i32 = arith.constant 0 : i32
    %c0_i32_0 = arith.constant 0 : i32
    return %arg0, %c0_i32 : i32, i32
  }
  func.func @transform_1(%arg0: i32) -> (i32, i32) {
    %c0_i32 = arith.constant 0 : i32
    %c0_i32_0 = arith.constant 0 : i32
    %c0_i32_1 = arith.constant 0 : i32
    return %c0_i32, %c0_i32_0 : i32, i32
  }
  func.func @transform_2(%arg0: i32) -> (i32, i32) {
    %c0_i32 = arith.constant 0 : i32
    %c0_i32_0 = arith.constant 0 : i32
    %c0_i32_1 = arith.constant 0 : i32
    return %c0_i32, %c0_i32_0 : i32, i32
  }
  func.func @transform_3(%arg0: i32) -> (i32, i32) {
    %c0_i32 = arith.constant 0 : i32
    %c0_i32_0 = arith.constant 0 : i32
    %c0_i32_1 = arith.constant 0 : i32
    return %c0_i32, %c0_i32_0 : i32, i32
  }
  func.func @transform_4(%arg0: i32) -> (i32, i32) {
    %c0_i32 = arith.constant 0 : i32
    %c0_i32_0 = arith.constant 0 : i32
    %c0_i32_1 = arith.constant 0 : i32
    return %c0_i32, %c0_i32_0 : i32, i32
  }
  func.func @transform_5(%arg0: i32) -> (i32, i32) {
    %c0_i32 = arith.constant 0 : i32
    %c0_i32_0 = arith.constant 0 : i32
    %c0_i32_1 = arith.constant 0 : i32
    return %c0_i32, %c0_i32_0 : i32, i32
  }
  func.func @transform_6(%arg0: i32) -> (i32, i32) {
    %c0_i32 = arith.constant 0 : i32
    %c0_i32_0 = arith.constant 0 : i32
    %c0_i32_1 = arith.constant 0 : i32
    return %c0_i32, %c0_i32_0 : i32, i32
  }
  func.func @transform_7(%arg0: i32) -> (i32, i32) {
    %c0_i32 = arith.constant 0 : i32
    %c0_i32_0 = arith.constant 0 : i32
    return %arg0, %c0_i32 : i32, i32
  }
}

</mosaic_0001>

<bundles_post_ra>
// kernel: tpu_custom_call.1
= control target key start
LH: loop header
LB: loop body
LE: loop exit
PB: predicated region body
PF: predicated region fallthrough
CT: control target
= control target key end

     0   :  { %12 = vsyncpa [#allocation3], 0  ;;  %s542_s0 = inlined_call_operand.hbm [shape: bf16[8,16], index: 0, kind: input, shape index: {}]   ;;  %s543_s1 = inlined_call_operand.hbm [shape: bf16[16,32], index: 1, kind: input, shape index: {}]   ;;  %s544_s2 = inlined_call_operand.vmem [shape: f32[1,32], index: 2, kind: input, shape index: {}]   ;;  %s545_s3 = inlined_call_operand.hbm [shape: bf16[32,32], index: 3, kind: input, shape index: {}]   ;;  %s546_s4 = inlined_call_operand.vmem [shape: f32[1,32], index: 4, kind: input, shape index: {}]   ;;  %s547_s5 = inlined_call_operand.hbm [shape: bf16[32,128], index: 5, kind: input, shape index: {}]   ;;  %s548_s6 = inlined_call_operand.vmem [shape: f32[1,128], index: 6, kind: input, shape index: {}]   ;;  %s549_s7 = inlined_call_operand.hbm [shape: bf16[8,128], index: 7, kind: output, shape index: {}]  }
   0x1   :  { %13 = vsyncpa [#allocation6], 0 }
   0x2   :  { %14 = vsyncpa [#allocation9], 0 }
   0x3   :  { %15 = vsyncpa [#allocation4], 0  ;;  %s460_s24 = smov [#allocation5]  }
   0x4   :  { %s31_s25 = sshll.u32 %s460_s24, 4  ;;  %s32_s25 = int_to_ptr.vmem [resolvable:$true] %s31_s25 }
   0x5   :  { %s360_s26 = scalar_lea.vmem %s32_s25, 128  ;;  %p365_p1 = scmp.lt.s32.totalorder %s32_s25, %s32_s25 }
   0x6   :  { %p361_p0 = scmp.ne.s32.totalorder %s32_s25, %s360_s26  ;;  %p366_p2 = scmp.lt.s32.totalorder %s360_s26, %s360_s26 }
   0x8   :  { %p367_p3 = por %p366_p2, %p365_p1 }
   0xa   :  { %p368_p4 = pnand %p367_p3, %p361_p0 }
   0xc   :  { %371 = shalt.err (!%p368_p4)
}
   0xd   :  { %s461_s27 = smov 64   ;;  %s462_s28 = smov 4  }
   0xe   :  { %37 = dma.hbm_to_vmem [thread:$0]  %s543_s1, 128, %s32_s25, [#allocation6], %s461_s27, %s461_s27, %s462_s28  }
   0xf   :  { %s463_s8 = smov [#allocation2]   ;;  %s464_s10 = smov [#allocation7]  }
  0x10   :  { %s22_s9 = sshll.u32 %s463_s8, 4  ;;  %s45_s11 = sshll.u32 %s464_s10, 4  ;;  %s23_s9 = int_to_ptr.vmem [resolvable:$true] %s22_s9  ;;  %s46_s11 = int_to_ptr.vmem [resolvable:$true] %s45_s11 }
  0x11   :  { %s380_s12 = scalar_lea.vmem %s23_s9, 64  ;;  %p385_p6 = scmp.lt.s32.totalorder %s23_s9, %s23_s9 }
  0x12   :  { %p381_p5 = scmp.ne.s32.totalorder %s23_s9, %s380_s12  ;;  %p386_p7 = scmp.lt.s32.totalorder %s380_s12, %s380_s12 }
  0x14   :  { %p387_p8 = por %p386_p7, %p385_p6 }
  0x16   :  { %p388_p9 = pnand %p387_p8, %p381_p5 }
  0x18   :  { %391 = shalt.err (!%p388_p9)
}
  0x19   :  { %25 = dma.hbm_to_vmem [thread:$0]  %s542_s0, 64, %s23_s9, [#allocation3]  }
  0x1a   :  { %s400_s15 = scalar_lea.vmem %s46_s11, 256  ;;  %p405_p11 = scmp.lt.s32.totalorder %s46_s11, %s46_s11 }
  0x1b   :  { %p401_p10 = scmp.ne.s32.totalorder %s46_s11, %s400_s15  ;;  %p406_p12 = scmp.lt.s32.totalorder %s400_s15, %s400_s15 }
  0x1d   :  { %p407_p13 = por %p406_p12, %p405_p11 }
  0x1f   :  { %p408_p0 = pnand %p407_p13, %p401_p10 }
  0x21   :  { %411 = shalt.err (!%p408_p0)
}
  0x22   :  { %51 = dma.hbm_to_vmem [thread:$0]  %s545_s3, 256, %s46_s11, [#allocation6], %s461_s27, %s461_s27, %s462_s28  }
  0x23   :  { %s465_s17 = smov [#allocation8]  }
  0x24   :  { %s59_s18 = sshll.u32 %s465_s17, 4  ;;  %s60_s18 = int_to_ptr.vmem [resolvable:$true] %s59_s18 }
  0x25   :  { %s420_s19 = scalar_lea.vmem %s60_s18, 256  ;;  %p425_p2 = scmp.lt.s32.totalorder %s60_s18, %s60_s18 }
  0x26   :  { %p421_p1 = scmp.ne.s32.totalorder %s60_s18, %s420_s19  ;;  %p426_p3 = scmp.lt.s32.totalorder %s420_s19, %s420_s19 }
  0x28   :  { %p427_p4 = por %p426_p3, %p425_p2 }
  0x2a   :  { %p428_p5 = pnand %p427_p4, %p421_p1 }
  0x2c   :  { %431 = shalt.err (!%p428_p5)
}
  0x2d   :  { %65 = dma.hbm_to_vmem [thread:$0]  %s547_s5, 256, %s60_s18, [#allocation9], %s461_s27, %s461_s27, %s462_s28  }
  0x2e   :  { %452 = dma.done.wait [#allocation3], 64  }
  0x2f   :  { %453 = vsyncadd [#allocation3], 4294967232 }
  0x30   :  { %454 = dma.done.wait [#allocation6], 384  }
  0x31   :  { %455 = vsyncadd [#allocation6], 4294966912 }
  0x32   :  { %456 = dma.done.wait [#allocation9], 256  }
  0x33   :  { %457 = vsyncadd [#allocation9], 4294967040  ;;  %v466_v0 = vmov 0.0   ;;  %vm467_vm0 = vmmov 0   ;;  %v347_v1 = vld [vmem:[#allocation5] sm:$0xff]   ;;  %vm97_vm1 = vcmask 130048  }
  0x34   :  { %316 = vmatprep.subr.bf16.mxu0 %v466_v0  ;;  %318 = vmatprep.mubr.msk.bf16.mxu0 %vm467_vm0, %v466_v0  ;;  %v81_v2 = vld [vmem:[#allocation2] sm:$0xf]  ;;  %v348_v3 = vld [vmem:[#allocation7 + $0x8] sm:$0xff]   ;;  %v349_v4 = vld [vmem:[#allocation7] sm:$0xff]   ;;  %vm166_vm2 = vcmask 261120   ;;  %s468_s24 = smov [#allocation10]  }
  0x35   :  { %322 = vmatprep.subr.bf16.mxu1 %v466_v0  ;;  %326 = vmatprep.mubr.msk.bf16.mxu1 %vm467_vm0, %v466_v0  ;;  %v350_v5 = vld [vmem:[#allocation8 + $0x8] sm:$0xff]   ;;  %v297_v6 = vld [vmem:[%s544_s2] ss:$0 sm:$0xff]  ;;  %s286_s25 = sshll.u32 %s468_s24, 4  ;;  %s287_s25 = int_to_ptr.vmem [resolvable:$true] %s286_s25 }
  0x36   :  { %317 = vmatpush3.bf16.msra.mxu0 %v347_v1  ;;  %323 = vmatpush3.bf16.msra.mxu1 %v348_v3  ;;  %v351_v14 = vld [vmem:[#allocation8] sm:$0xff]   ;;  %p437_p7 = scmp.lt.s32.totalorder %s287_s25, %s287_s25 }
  0x37   :  { %330 = vmatprep.subr.bf16.mxu0 %v466_v0  ;;  %324 = vmatprep.subr.bf16.mxu1 %v466_v0  ;;  %v300_v15 = vld [vmem:[%s546_s4] ss:$0 sm:$0xff]  ;;  %s432_s4 = scalar_lea.vmem %s287_s25, 64 }
  0x38   :  { %v304_v23 = vld [vmem:[%s548_s6] ss:$0 sm:$0xff]  ;;  %p433_p6 = scmp.ne.s32.totalorder %s287_s25, %s432_s4  ;;  %p438_p8 = scmp.lt.s32.totalorder %s432_s4, %s432_s4 }
  0x39   :  { %319 = vmatmul.mubr.msk.bf16.vlgmr.msra.gmra.mxu0 %vm97_vm1, %v81_v2 }
  0x3a   :  { %334 = vmatprep.mubr.msk.bf16.mxu0 %vm467_vm0, %v466_v0  ;;  %325 = vmatpush3.bf16.msra.mxu1 %v349_v4  ;;  %p439_p9 = por %p438_p8, %p437_p7 }
  0x3b   :  { %331 = vmatpush3.bf16.msra.mxu0 %v350_v5 }
  0x3c   :  { %332 = vmatprep.subr.bf16.mxu0 %v466_v0  ;;  %p440_p10 = pnand %p439_p9, %p433_p6 }
  0x3f   :  { %333 = vmatpush3.bf16.msra.mxu0 %v351_v14 }
  0xf9   :  { %v135_v7 = vpop.f32.mrf.mxu0 }
  0xfa   :  { %v136_v8 = vadd.f32 %v297_v6, %v135_v7 }
  0xfb   :  { %v320_v9 = vpop.f32.mrf.mxu0 }
  0xfc   :  { %v141_v10 = vmax.f32 %v136_v8, 0.0 }
  0xfd   :  { %v138_v11 = vpop.f32.mrf.mxu0 }
  0xfe   :  { %v142_v12 = vpack.c.bf16 %v141_v10, %v141_v10 }
  0xff   :  { %v321_v13 = vpop.f32.mrf.mxu0 }
 0x100   :  { %327 = vmatmul.mubr.msk.bf16.vlgmr.msra.gmra.mxu1 %vm166_vm2, %v142_v12 }
 0x1c0   :  { %v204_v16 = vpop.f32.mrf.mxu1 }
 0x1c1   :  { %v205_v17 = vadd.f32 %v300_v15, %v204_v16 }
 0x1c2   :  { %v328_v18 = vpop.f32.mrf.mxu1 }
 0x1c3   :  { %v210_v19 = vmax.f32 %v205_v17, 0.0 }
 0x1c4   :  { %v207_v20 = vpop.f32.mrf.mxu1 }
 0x1c5   :  { %v211_v21 = vpack.c.bf16 %v210_v19, %v210_v19 }
 0x1c6   :  { %v329_v22 = vpop.f32.mrf.mxu1 }
 0x1c7   :  { %335 = vmatmul.mubr.msk.bf16.vlgmr.msra.gmra.mxu0 %vm166_vm2, %v211_v21 }
 0x287   :  { %v272_v24 = vpop.f32.mrf.mxu0 }
 0x288   :  { %v273_v25 = vadd.f32 %v304_v23, %v272_v24 }
 0x289   :  { %v336_v26 = vpop.f32.mrf.mxu0 }
 0x28a   :  { %v278_v27 = vpack.c.bf16 %v273_v25, %v273_v25 }
 0x28b   :  { %v275_v28 = vpop.f32.mrf.mxu0 }
 0x28c   :  { %279 = vst [vmem:[#allocation10] sm:$0xf] %v278_v27 }
 0x28d   :  { %v337_v29 = vpop.f32.mrf.mxu0 }
 0x28e   :  { %443 = shalt.err (!%p440_p10)
}
 0x28f   :  { %289 = dma.vmem_to_hbm [thread:$0]  %s287_s25, 64, %s549_s7, [#allocation4]  }
 0x290   :  { %458 = dma.done.wait [#allocation4], 64  }
 0x291   :  { %459 = vsyncadd [#allocation4], 4294967232 }
 0x292   :  { %293 = vsyncpa [#allocation3], 1 }
 0x293   :  { %294 = vsyncpa [#allocation6], 1 }
 0x294   :  { %295 = vsyncpa [#allocation9], 1 }
 0x295   :  { %296 = vsyncpa [#allocation4], 1 }

</bundles_post_ra>
